<compile_context>
chip_gen: v6e
topology: v6e:2x2x1
jax: 0.10.0
libtpu: 0.0.40
codegen_flags: <defaults>
</compile_context>

<pallas_src>
import jax
import jax.numpy as jnp
from jax.experimental import pallas as pl
from jax.experimental.pallas import tpu as pltpu


def _round_up(x, m):
    return ((x + m - 1) // m) * m


def make_qnet_kernel(state_dim, use_vpu_fc1):
    """Kernel for one batch tile; activations transposed (batch on lanes).

    xT : (state_dim,  bt)          f32  -- lane-dense load, streamed per tile
    w1 : (hidden_dim, state_dim)   f32  -- resident across tiles
    b1 : (hidden_dim, 1)           f32
    w2 : (action_dim, hidden_dim)  f32  -- resident across tiles
    b2 : (action_dim, 1)           f32
    out: (action_dim, bt)          f32  -- lane-dense store
    """

    def qnet_kernel(xT_ref, w1_ref, b1_ref, w2_ref, b2_ref, outT_ref):
        xT = xT_ref[...]                              # (S, bt)
        w1 = w1_ref[...]                              # (H, S)
        if use_vpu_fc1:
            # fc1 on the VPU: K = state_dim broadcast FMAs, exact f32.
            # (H,1) * (1,bt) -> (H,bt); unrolled at trace time (state_dim is static).
            acc = w1[:, 0:1] * xT[0:1, :]
            for k in range(1, state_dim):
                acc = acc + w1[:, k:k + 1] * xT[k:k + 1, :]
        else:
            # Larger state_dim: use the MXU instead.
            acc = jnp.dot(w1, xT, preferred_element_type=jnp.float32)
        h = jnp.maximum(acc + b1_ref[...], 0.0)       # bias + ReLU epilogue (VPU, f32)
        # fc2 on the MXU: (A,H) @ (H,bt) -> (A,bt), f32 accumulation.
        q = jnp.dot(w2_ref[...], h, preferred_element_type=jnp.float32)
        outT_ref[...] = (q + b2_ref[...]).astype(outT_ref.dtype)

    return qnet_kernel


def qnet_forward_qT(xT, w1, b1, w2, b2, *, block_batch=16384):
    """Fast path: xT is (state_dim, batch); returns qT = (action_dim, batch).

    No wrapper-side layout copies -- keep x stored transposed upstream (e.g. in
    the replay buffer) and take argmax over actions on axis 0 of the result.
    """
    hidden_dim, state_dim = w1.shape
    action_dim = w2.shape[0]
    batch = xT.shape[1]

    # >= 2 tiles so v7x's two TensorCores both get work; tile width is a multiple
    # of 128 lanes.  cdiv grid => ragged last tile is clipped by Pallas (no pad).
    n_tiles = max(2, pl.cdiv(batch, block_batch))
    bt = _round_up(pl.cdiv(batch, n_tiles), 128)
    grid = (pl.cdiv(batch, bt),)

    kernel = make_qnet_kernel(state_dim, use_vpu_fc1=(state_dim <= 8))

    qT = pl.pallas_call(
        kernel,
        out_shape=jax.ShapeDtypeStruct((action_dim, batch), jnp.float32),
        grid=grid,
        in_specs=[
            pl.BlockSpec((state_dim, bt), lambda i: (0, i)),           # x: streamed per tile
            pl.BlockSpec((hidden_dim, state_dim), lambda i: (0, 0)),   # weights stay in VMEM
            pl.BlockSpec((hidden_dim, 1), lambda i: (0, 0)),
            pl.BlockSpec((action_dim, hidden_dim), lambda i: (0, 0)),
            pl.BlockSpec((action_dim, 1), lambda i: (0, 0)),
        ],
        out_specs=pl.BlockSpec((action_dim, bt), lambda i: (0, i)),    # lane-dense stores
        compiler_params=pltpu.CompilerParams(
            dimension_semantics=("parallel",),   # shard batch tiles across v7x's 2 TCs
        ),
    )(
        xT.astype(jnp.float32),
        w1.astype(jnp.float32),
        b1.reshape(hidden_dim, 1).astype(jnp.float32),
        w2.astype(jnp.float32),
        b2.reshape(action_dim, 1).astype(jnp.float32),
    )
    return qT


def qnet_forward(x, w1, b1, w2, b2, *, block_batch=16384, min_pallas_batch=256):
    """Mirrors Qnet.forward: x.reshape(-1, state_dim); relu(fc1(x)); fc2(...).

    w1: (hidden_dim, state_dim), b1: (hidden_dim,)
    w2: (action_dim, hidden_dim), b2: (action_dim,)
    Returns (batch, action_dim) float32.
    """
    state_dim = w1.shape[1]
    x2d = jnp.reshape(x, (-1, state_dim))
    batch = x2d.shape[0]

    if batch < min_pallas_batch:
        # Tiny batches (single-env action selection): fixed pallas_call launch plus
        # layout plumbing exceeds the whole 4->32->2 net's FLOPs; plain XLA wins.
        xf = x2d.astype(jnp.float32)
        h = jnp.maximum(xf @ w1.T.astype(jnp.float32) + b1.astype(jnp.float32), 0.0)
        return h @ w2.T.astype(jnp.float32) + b2.astype(jnp.float32)

    # PyTorch-layout compat path: one transpose pass to put batch on the lane axis
    # (and one on the way back).  For zero-copy, call qnet_forward_qT directly.
    qT = qnet_forward_qT(x2d.T, w1, b1, w2, b2, block_batch=block_batch)
    return qT.T


def init_qnet_params(key, state_dim, hidden_dim, action_dim):
    """PyTorch Linear-style init: U(-1/sqrt(fan_in), +1/sqrt(fan_in)); (out, in) layout."""
    k1, k2, k3, k4 = jax.random.split(key, 4)
    bound1 = 1.0 / jnp.sqrt(jnp.float32(state_dim))
    bound2 = 1.0 / jnp.sqrt(jnp.float32(hidden_dim))
    w1 = jax.random.uniform(k1, (hidden_dim, state_dim), jnp.float32, -bound1, bound1)
    b1 = jax.random.uniform(k2, (hidden_dim,), jnp.float32, -bound1, bound1)
    w2 = jax.random.uniform(k3, (action_dim, hidden_dim), jnp.float32, -bound2, bound2)
    b2 = jax.random.uniform(k4, (action_dim,), jnp.float32, -bound2, bound2)
    return w1, b1, w2, b2


def qnet_ref_f32(x, w1, b1, w2, b2):
    """Pure f32 reference of the module semantics."""
    x2 = x.reshape(-1, w1.shape[1]).astype(jnp.float32)
    h = jnp.maximum(x2 @ w1.T + b1, 0.0)
    return h @ w2.T + b2


if __name__ == "__main__":
    state_dim, hidden_dim, action_dim = 4, 32, 2   # CartPole-like DQN head

    key = jax.random.PRNGKey(0)
    kx1, kx2, kx3, kp = jax.random.split(key, 4)
    w1, b1, w2, b2 = init_qnet_params(kp, state_dim, hidden_dim, action_dim)

    # 1) Pallas path: two full lane-dense batch tiles (v7x megacore gets both TCs busy).
    x1 = jax.random.normal(kx1, (512, state_dim), jnp.float32)
    q1 = jax.block_until_ready(qnet_forward(x1, w1, b1, w2, b2))
    r1 = qnet_ref_f32(x1, w1, b1, w2, b2)
    assert q1.shape == (512, action_dim)
    assert jnp.allclose(q1, r1, atol=1e-2, rtol=1e-2), float(jnp.max(jnp.abs(q1 - r1)))

    # 2) Ragged batch: exercises the cdiv grid / clipped last tile (no host-side padding).
    x2 = jax.random.normal(kx2, (333, state_dim), jnp.float32)
    q2 = jax.block_until_ready(qnet_forward(x2, w1, b1, w2, b2))
    r2 = qnet_ref_f32(x2, w1, b1, w2, b2)
    assert q2.shape == (333, action_dim)
    assert jnp.allclose(q2, r2, atol=1e-2, rtol=1e-2), float(jnp.max(jnp.abs(q2 - r2)))

    # 3) Tiny batch + the module's reshape(-1, state_dim) semantics: jnp fallback path.
    x3 = jax.random.normal(kx3, (2, 4, state_dim), jnp.float32)
    q3 = jax.block_until_ready(qnet_forward(x3, w1, b1, w2, b2))
    r3 = qnet_ref_f32(x3, w1, b1, w2, b2)
    assert q3.shape == (8, action_dim)
    assert jnp.allclose(q3, r3, atol=1e-4, rtol=1e-4)

    print("KERNEL_OK")
</pallas_src>

<mosaic_0001>
module attributes {stable_mosaic.version = 11 : i64} {
  func.func @qnet_kernel(%arg0: i32, %arg1: memref<4x256xf32, #tpu.memory_space<vmem>>, %arg2: memref<32x4xf32, #tpu.memory_space<vmem>>, %arg3: memref<32x1xf32, #tpu.memory_space<vmem>>, %arg4: memref<2x32xf32, #tpu.memory_space<vmem>>, %arg5: memref<2x1xf32, #tpu.memory_space<vmem>>, %arg6: memref<2x256xf32, #tpu.memory_space<vmem>>) attributes {dimension_semantics = [#tpu.dimension_semantics<parallel>], iteration_bounds = array<i64: 2>, scalar_prefetch = 0 : i64, scratch_operands = 0 : i64, tpu.core_type = #tpu.core_type<tc>, window_params = [{transform_indices = @transform_0, window_bounds = array<i64: 4, 256>}, {pipeline_mode = #tpu.pipeline_mode<synchronous>, transform_indices = @transform_1, window_bounds = array<i64: 32, 4>}, {pipeline_mode = #tpu.pipeline_mode<synchronous>, transform_indices = @transform_2, window_bounds = array<i64: 32, 1>}, {pipeline_mode = #tpu.pipeline_mode<synchronous>, transform_indices = @transform_3, window_bounds = array<i64: 2, 32>}, {pipeline_mode = #tpu.pipeline_mode<synchronous>, transform_indices = @transform_4, window_bounds = array<i64: 2, 1>}, {transform_indices = @transform_5, window_bounds = array<i64: 2, 256>}]} {
    %c0 = arith.constant 0 : index
    %c0_0 = arith.constant 0 : index
    %0 = vector.load %arg1[%c0, %c0_0] : memref<4x256xf32, #tpu.memory_space<vmem>>, vector<4x256xf32>
    %c0_1 = arith.constant 0 : index
    %c0_2 = arith.constant 0 : index
    %1 = vector.load %arg2[%c0_1, %c0_2] : memref<32x4xf32, #tpu.memory_space<vmem>>, vector<32x4xf32>
    %2 = vector.extract_strided_slice %1 {offsets = [0, 0], sizes = [32, 1], strides = [1, 1]} : vector<32x4xf32> to vector<32x1xf32>
    %3 = vector.extract_strided_slice %0 {offsets = [0, 0], sizes = [1, 256], strides = [1, 1]} : vector<4x256xf32> to vector<1x256xf32>
    %4 = vector.broadcast %2 : vector<32x1xf32> to vector<32x256xf32>
    %5 = vector.broadcast %3 : vector<1x256xf32> to vector<32x256xf32>
    %6 = arith.mulf %4, %5 : vector<32x256xf32>
    %7 = vector.extract_strided_slice %1 {offsets = [0, 1], sizes = [32, 1], strides = [1, 1]} : vector<32x4xf32> to vector<32x1xf32>
    %8 = vector.extract_strided_slice %0 {offsets = [1, 0], sizes = [1, 256], strides = [1, 1]} : vector<4x256xf32> to vector<1x256xf32>
    %9 = vector.broadcast %7 : vector<32x1xf32> to vector<32x256xf32>
    %10 = vector.broadcast %8 : vector<1x256xf32> to vector<32x256xf32>
    %11 = arith.mulf %9, %10 : vector<32x256xf32>
    %12 = arith.addf %6, %11 : vector<32x256xf32>
    %13 = vector.extract_strided_slice %1 {offsets = [0, 2], sizes = [32, 1], strides = [1, 1]} : vector<32x4xf32> to vector<32x1xf32>
    %14 = vector.extract_strided_slice %0 {offsets = [2, 0], sizes = [1, 256], strides = [1, 1]} : vector<4x256xf32> to vector<1x256xf32>
    %15 = vector.broadcast %13 : vector<32x1xf32> to vector<32x256xf32>
    %16 = vector.broadcast %14 : vector<1x256xf32> to vector<32x256xf32>
    %17 = arith.mulf %15, %16 : vector<32x256xf32>
    %18 = arith.addf %12, %17 : vector<32x256xf32>
    %19 = vector.extract_strided_slice %1 {offsets = [0, 3], sizes = [32, 1], strides = [1, 1]} : vector<32x4xf32> to vector<32x1xf32>
    %20 = vector.extract_strided_slice %0 {offsets = [3, 0], sizes = [1, 256], strides = [1, 1]} : vector<4x256xf32> to vector<1x256xf32>
    %21 = vector.broadcast %19 : vector<32x1xf32> to vector<32x256xf32>
    %22 = vector.broadcast %20 : vector<1x256xf32> to vector<32x256xf32>
    %23 = arith.mulf %21, %22 : vector<32x256xf32>
    %24 = arith.addf %18, %23 : vector<32x256xf32>
    %c0_3 = arith.constant 0 : index
    %c0_4 = arith.constant 0 : index
    %25 = vector.load %arg3[%c0_3, %c0_4] : memref<32x1xf32, #tpu.memory_space<vmem>>, vector<32x1xf32>
    %26 = vector.broadcast %25 : vector<32x1xf32> to vector<32x256xf32>
    %27 = arith.addf %24, %26 : vector<32x256xf32>
    %cst = arith.constant 0.000000e+00 : f32
    %28 = vector.broadcast %cst : f32 to vector<32x256xf32>
    %29 = arith.maximumf %27, %28 : vector<32x256xf32>
    %c0_5 = arith.constant 0 : index
    %c0_6 = arith.constant 0 : index
    %30 = vector.load %arg4[%c0_5, %c0_6] : memref<2x32xf32, #tpu.memory_space<vmem>>, vector<2x32xf32>
    %cst_7 = arith.constant dense<0.000000e+00> : vector<2x256xf32>
    %31 = tpu.matmul %30, %29, %cst_7 {dimension_numbers = #tpu.dot_dimension_numbers<[1], [0], [0], [1], [0, 0, 1, 1], [], []>} : vector<2x32xf32>, vector<32x256xf32>, vector<2x256xf32> -> vector<2x256xf32>
    %c0_8 = arith.constant 0 : index
    %c0_9 = arith.constant 0 : index
    %32 = vector.load %arg5[%c0_8, %c0_9] : memref<2x1xf32, #tpu.memory_space<vmem>>, vector<2x1xf32>
    %33 = vector.broadcast %32 : vector<2x1xf32> to vector<2x256xf32>
    %34 = arith.addf %31, %33 : vector<2x256xf32>
    %c0_10 = arith.constant 0 : index
    %c0_11 = arith.constant 0 : index
    %35 = vector.load %arg6[%c0_10, %c0_11] : memref<2x256xf32, #tpu.memory_space<vmem>>, vector<2x256xf32>
    tpu.vector_store %arg6[%c0_10, %c0_11], %34 {strides = array<i32>} : memref<2x256xf32, #tpu.memory_space<vmem>>, vector<2x256xf32>,
    return
  }
  func.func @transform_0(%arg0: i32) -> (i32, i32) {
    %c0_i32 = arith.constant 0 : i32
    %c0_i32_0 = arith.constant 0 : i32
    return %c0_i32, %arg0 : i32, i32
  }
  func.func @transform_1(%arg0: i32) -> (i32, i32) {
    %c0_i32 = arith.constant 0 : i32
    %c0_i32_0 = arith.constant 0 : i32
    %c0_i32_1 = arith.constant 0 : i32
    return %c0_i32, %c0_i32_0 : i32, i32
  }
  func.func @transform_2(%arg0: i32) -> (i32, i32) {
    %c0_i32 = arith.constant 0 : i32
    %c0_i32_0 = arith.constant 0 : i32
    %c0_i32_1 = arith.constant 0 : i32
    return %c0_i32, %c0_i32_0 : i32, i32
  }
  func.func @transform_3(%arg0: i32) -> (i32, i32) {
    %c0_i32 = arith.constant 0 : i32
    %c0_i32_0 = arith.constant 0 : i32
    %c0_i32_1 = arith.constant 0 : i32
    return %c0_i32, %c0_i32_0 : i32, i32
  }
  func.func @transform_4(%arg0: i32) -> (i32, i32) {
    %c0_i32 = arith.constant 0 : i32
    %c0_i32_0 = arith.constant 0 : i32
    %c0_i32_1 = arith.constant 0 : i32
    return %c0_i32, %c0_i32_0 : i32, i32
  }
  func.func @transform_5(%arg0: i32) -> (i32, i32) {
    %c0_i32 = arith.constant 0 : i32
    %c0_i32_0 = arith.constant 0 : i32
    return %c0_i32, %arg0 : i32, i32
  }
}

</mosaic_0001>

<bundles_post_ra>
// kernel: tpu_custom_call.1
= control target key start
LH: loop header
LB: loop body
LE: loop exit
PB: predicated region body
PF: predicated region fallthrough
CT: control target
= control target key end

     0   :  { %10 = vsyncpa [#allocation3], 0  ;;  %s952_s0 = inlined_call_operand.vmem [shape: f32[4,512], index: 0, kind: input, shape index: {}]   ;;  %s953_s1 = inlined_call_operand.vmem [shape: f32[32,4], index: 1, kind: input, shape index: {}]   ;;  %s954_s2 = inlined_call_operand.vmem [shape: f32[32,1], index: 2, kind: input, shape index: {}]   ;;  %s955_s3 = inlined_call_operand.vmem [shape: f32[2,32], index: 3, kind: input, shape index: {}]   ;;  %s956_s4 = inlined_call_operand.vmem [shape: f32[2,1], index: 4, kind: input, shape index: {}]   ;;  %s957_s5 = inlined_call_operand.hbm [shape: f32[2,512], index: 5, kind: output, shape index: {}]  }
   0x1   :  { %12 = vsyncpa [#allocation3 + $0x1], 0  ;;  %s810_s18 = smov 0   ;;  %s812_s19 = smov 0  }
   0x2   :  { %s814_s20 = smov 0   ;;  %s816_s21 = smov 0  }
   0x3 LB: > { %s831_s22 = sadd.s32 4294967295, %s772_s21   ;;  %s636_s23 = sadd.s32 4294967294, %s772_s21   ;;  %s772_s21 = sphi %s816_s21, %s963_s21   ;;  %s768_s20 = sphi %s814_s20, %s962_s20   ;;  %s764_s19 = sphi %s812_s19, %s961_s19   ;;  %s760_s18 = sphi %s810_s18, %s960_s18  }
   0x4   : > { %s835_s24 = sadd.s32 1, %s772_s21   ;;  %s135_s25 = sadd.s32 1, %s768_s20 }
   0x5   : > { %s132_s26 = ssub.s32 %s772_s21, %s835_s24  ;;  %p145_p0 = scmp.ne.s32.totalorder %s768_s20, %s764_s19 }
   0x6   : > { %p133_p1 = scmp.eq.s32.totalorder %s132_s26, 0  ;;  %p146_p2 = scmp.eq.s32.totalorder %s831_s22, 1 }
   0x7   : > { %p151_p3 = scmp.ne.s32.totalorder %s764_s19, %s760_s18  ;;  %p152_p4 = scmp.eq.s32.totalorder %s636_s23, 1 }
   0x8   : > { %s846_s27 = scalar_select %p133_p1, %s768_s20, %s135_s25  }
   0x9   : > { %p848_p5 = por %p146_p2, %p145_p0  ;;  %p852_p6 = por %p152_p4, %p151_p3 }
   0xa   : > { %p639_p7 = scmp.ge.s32.totalorder %s772_s21, 1  ;;  %p191_p8 = scmp.lt.s32.totalorder %s772_s21, 3 }
   0xc   : > { %p192_p9 = pnand %p639_p7, %p191_p8 }
   0xd   : > { %s641_s7 = sshll.u32 (!%p192_p9), %s831_s22, 1  ;;  %s216_s14 = sand.u32 (!%p192_p9), 1, %s764_s19  }
   0xe   : > { %195 = sbr.rel (%p192_p9) target bundleno = 422 (0x1a6), region = 40  ;;  %p220_p10 = scmp.lt.s32.totalorder (!%p192_p9), %s641_s7, 3 }
   0xf   : > { %s640_s15 = sshll.u32 (!%p192_p9), %s216_s14, 2  ;;  %s650_s16 = sshll.u32 (!%p192_p9), %s831_s22, 6 }
  0x10   : > { %s218_s17 = scalar_lea.vmem (!%p192_p9), [#allocation2], %s640_s15  ;;  %s575_s30 = scalar_lea.hbm (!%p192_p9), %s957_s5, %s650_s16 }
  0x11   : > { %s577_s23 = sshll.u32 (!%p192_p9), %s218_s17, 4  ;;  %s563_s6 = scalar_lea.sflag (!%p192_p9), [#allocation3], %s216_s14  ;;  %s578_s23 = int_to_ptr.vmem [resolvable:$true] %s577_s23 }
  0x13   : > { %v230_v0 = vld [vmem:[%s953_s1 + $0x18] sm:$0xff]  ;;  %v229_v1 = vld [vmem:[%s953_s1 + $0x10] sm:$0xff]  ;;  %v774_v2 = vmov 1   ;;  %v775_v3 = vmov 0   ;;  %v228_v4 = vld [vmem:[%s953_s1 + $0x8] sm:$0xff]  ;;  %v776_v5 = vmov 2   ;;  %v252_v18 = vlaneseq }
  0x14   : > { %695 = vset.pattern.permute.xlu0 %v774_v2  ;;  %697 = vset.pattern.permute.xlu1 %v775_v3  ;;  %v777_v6 = vmov 3   ;;  %v227_v7 = vld [vmem:[%s953_s1] sm:$0xff]  ;;  %v430_v8 = vld [vmem:[%s954_s2 + $0x10] sm:$0xff]  ;;  %v431_v10 = vld [vmem:[%s954_s2 + $0x18] sm:$0xff]  ;;  %v778_v13 = vmov 0.0   ;;  %s965_s7 = smov (!%p220_p10, %s641_s7), 3 }
  0x15   : > { %291 = vperm.xlu0 %695, %v230_v0   ;;  %243 = vperm.xlu1 %697, %v229_v1   ;;  %v469_v9 = vld [vmem:[%s956_s4] sm:$0x3]  ;;  %v429_v11 = vld [vmem:[%s954_s2 + $0x8] sm:$0xff]  ;;  %s642_s8 = sshll.u32 %s965_s7, 2  ;;  %v253_v21 = vshrl.u32 %v252_v18, 7  ;;  %vm475_vm0 = vcmask 261120  }
  0x16   : > { %v428_v12 = vld [vmem:[%s954_s2] sm:$0xff]  ;;  %543 = vmatprep.mubr.f32.mxu0 %v778_v13  ;;  %s223_s11 = scalar_lea.vmem %s952_s0, %s642_s8  ;;  %s712_s7 = scalar_lea.vmem %s578_s23, 64 }
  0x17   : > { %v300_v23 = vsub.s32 5, %v253_v21  ;;  %v254_v25 = vsub.s32 0, %v253_v21  ;;  %v258_v26 = vsub.s32 4, %v253_v21  ;;  %v296_v27 = vsub.s32 1, %v253_v21  ;;  %v226_v28 = vld [vmem:[%s223_s11] sm:$0xff]  ;;  %p713_p11 = scmp.ne.s32.totalorder %s578_s23, %s712_s7  ;;  %s779_s8 = smov [#allocation2]  }
  0x18   : > { %v346_v31 = vsub.s32 2, %v253_v21  ;;  %v350_v32 = vsub.s32 6, %v253_v21  ;;  %v396_v37 = vsub.s32 3, %v253_v21  ;;  %v400_v38 = vsub.s32 7, %v253_v21  ;;  %s716_s9 = sshll.u32 %s779_s8, 4  ;;  %s717_s9 = int_to_ptr.vmem [resolvable:$false] %s716_s9 }
  0x19   : > { %696 = vset.pattern.permute.xlu0 %v775_v3  ;;  %698 = vset.pattern.permute.xlu1 %v774_v2  ;;  %v301_v29 = vrot.slane %v226_v28, %v300_v23  ;;  %v255_v33 = vrot.slane %v226_v28, %v254_v25  ;;  %v259_v34 = vrot.slane %v226_v28, %v258_v26  ;;  %p714_p12 = pnand %p713_p11, %p848_p5  ;;  %s718_s22 = scalar_lea.vmem %s717_s9, 128 }
  0x1a   : > { %248 = vperm.xlu0 %696, %v230_v0   ;;  %287 = vperm.xlu1 %698, %v229_v1   ;;  %v297_v35 = vrot.slane %v226_v28, %v296_v27  ;;  %v347_v40 = vrot.slane %v226_v28, %v346_v31  ;;  %v351_v41 = vrot.slane %v226_v28, %v350_v32  ;;  %p719_p0 = scmp.lt.s32.totalorder %s578_s23, %s717_s9  ;;  %p720_p1 = scmp.lt.s32.totalorder %s718_s22, %s712_s7 }
  0x1b   : > { %v893_v39 = vrot.slane %v301_v29, %v296_v27  ;;  %v895_v43 = vrot.slane %v255_v33, %v254_v25  ;;  %v897_v44 = vrot.slane %v259_v34, %v254_v25  ;;  %v397_v46 = vrot.slane %v226_v28, %v396_v37  ;;  %p715_p13 = pneg %p714_p12 }
  0x1c   : > { %v307_v45 = vrot.slane %v297_v35, %v296_v27  ;;  %v401_v47 = vrot.slane %v226_v28, %v400_v38  ;;  %v357_v54 = vrot.slane %v347_v40, %v346_v31  ;;  %v361_v55 = vrot.slane %v351_v41, %v346_v31  ;;  %p721_p2 = por %p720_p1, %p719_p0 }
  0x1d   : > { %v407_v59 = vrot.slane %v397_v46, %v396_v37 }
  0x1e   : > { %699 = vset.pattern.permute.xlu1 %v776_v5  ;;  %238 = vperm.xlu0 %696, %v228_v4   ;;  %v411_v60 = vrot.slane %v401_v47, %v396_v37  ;;  %p722_p3 = pnand %p721_p2, %p715_p13 }
  0x1f   : > { %341 = vperm.xlu1 %699, %v230_v0  }
  0x22   : > { %704 = vset.pattern.permute.xlu0 %v776_v5 }
  0x23   : > { %700 = vset.pattern.permute.xlu1 %v774_v2  ;;  %333 = vperm.xlu0 %704, %v228_v4  }
  0x24   : > { %283 = vperm.xlu1 %700, %v228_v4  }
  0x27   : > { %705 = vset.pattern.permute.xlu0 %v777_v6 }
  0x28   : > { %701 = vset.pattern.permute.xlu1 %v776_v5  ;;  %391 = vperm.xlu0 %705, %v230_v0  }
  0x29   : > { %337 = vperm.xlu1 %701, %v229_v1  }
  0x2c   : > { %383 = vperm.xlu0 %705, %v228_v4  }
  0x2d   : > { %702 = vset.pattern.permute.xlu1 %v775_v3 }
  0x2e   : > { %233 = vperm.xlu1 %702, %v227_v7  }
  0x30   : > { %710 = vset.pattern.permute.xlu0 %v775_v3 }
  0x31   : > { %444 = vperm.xlu0 %710, %v430_v8  }
  0x32   : > { %703 = vset.pattern.permute.xlu1 %v774_v2 }
  0x33   : > { %279 = vperm.xlu1 %703, %v227_v7  }
  0x35   : > { %472 = vperm.xlu0 %710, %v469_v9  }
  0x37   : > { %706 = vset.pattern.permute.xlu1 %v777_v6 }
  0x38   : > { %387 = vperm.xlu1 %706, %v229_v1  }
  0x3c   : > { %707 = vset.pattern.permute.xlu1 %v776_v5 }
  0x3d   : > { %329 = vperm.xlu1 %707, %v227_v7  }
  0x41   : > { %708 = vset.pattern.permute.xlu1 %v775_v3 }
  0x42   : > { %449 = vperm.xlu1 %708, %v431_v10  }
  0x46   : > { %709 = vset.pattern.permute.xlu1 %v777_v6 }
  0x47   : > { %379 = vperm.xlu1 %709, %v227_v7  }
  0x4b   : > { %711 = vset.pattern.permute.xlu1 %v775_v3 }
  0x4c   : > { %439 = vperm.xlu1 %711, %v429_v11  }
  0x50   : > { %434 = vperm.xlu1 %711, %v428_v12  }
  0x90   : > { %v244_v14 = vpop.permute.xlu1 %243  ;;  %v292_v16 = vpop.permute.xlu0 %291 }
  0x91   : > { %v318_v48 = vmul.f32 %v307_v45, %v292_v16  ;;  %v319_v52 = vmul.f32 %v893_v39, %v292_v16  ;;  %v275_v56 = vmul.f32 %v897_v44, %v244_v14  ;;  %v274_v62 = vmul.f32 %v895_v43, %v244_v14 }
  0x95   : > { %v288_v15 = vpop.permute.xlu1 %287  ;;  %v249_v19 = vpop.permute.xlu0 %248 }
  0x96   : > { %v317_v49 = vmul.f32 %v893_v39, %v288_v15  ;;  %v276_v50 = vmul.f32 %v895_v43, %v249_v19  ;;  %v277_v53 = vmul.f32 %v897_v44, %v249_v19  ;;  %v316_v57 = vmul.f32 %v307_v45, %v288_v15 }
  0x98   : > { %v325_v63 = vadd.f32 %v317_v49, %v275_v56  ;;  %v326_v0 = vadd.f32 %v318_v48, %v276_v50  ;;  %v327_v2 = vadd.f32 %v319_v52, %v277_v53  ;;  %v324_v6 = vadd.f32 %v316_v57, %v274_v62 }
  0x99   : > { %v239_v24 = vpop.permute.xlu0 %238 }
  0x9a   : > { %v342_v17 = vpop.permute.xlu1 %341  ;;  %v272_v18 = vmul.f32 %v895_v43, %v239_v24  ;;  %v273_v19 = vmul.f32 %v897_v44, %v239_v24 }
  0x9b   : > { %v368_v3 = vmul.f32 %v357_v54, %v342_v17  ;;  %v369_v4 = vmul.f32 %v361_v55, %v342_v17 }
  0x9d   : > { %v376_v15 = vadd.f32 %v368_v3, %v326_v0  ;;  %v377_v16 = vadd.f32 %v369_v4, %v327_v2 }
  0x9e   : > { %v334_v36 = vpop.permute.xlu0 %333 }
  0x9f   : > { %v886_v20 = vpop.permute.xlu1 %283  ;;  %v364_v28 = vmul.f32 %v357_v54, %v334_v36  ;;  %v365_v35 = vmul.f32 %v361_v55, %v334_v36 }
  0xa0   : > { %v314_v21 = vmul.f32 %v307_v45, %v886_v20  ;;  %v315_v17 = vmul.f32 %v893_v39, %v886_v20 }
  0xa2   : > { %v322_v33 = vadd.f32 %v314_v21, %v272_v18  ;;  %v323_v34 = vadd.f32 %v315_v17, %v273_v19 }
  0xa3   : > { %v392_v51 = vpop.permute.xlu0 %391 }
  0xa4   : > { %v338_v22 = vpop.permute.xlu1 %337  ;;  %v418_v9 = vmul.f32 %v407_v59, %v392_v51  ;;  %v419_v10 = vmul.f32 %v411_v60, %v392_v51  ;;  %v372_v49 = vadd.f32 %v364_v28, %v322_v33  ;;  %v373_v50 = vadd.f32 %v365_v35, %v323_v34 }
  0xa5   : > { %v367_v61 = vmul.f32 %v361_v55, %v338_v22  ;;  %v366_v1 = vmul.f32 %v357_v54, %v338_v22 }
  0xa6   : > { %v426_v25 = vadd.f32 %v418_v9, %v376_v15  ;;  %v427_v26 = vadd.f32 %v419_v10, %v377_v16 }
  0xa7   : > { %v384_v7 = vpop.permute.xlu0 %383  ;;  %v375_v11 = vadd.f32 %v367_v61, %v325_v63  ;;  %v374_v13 = vadd.f32 %v366_v1, %v324_v6 }
  0xa8   : > { %v414_v40 = vmul.f32 %v407_v59, %v384_v7  ;;  %v415_v41 = vmul.f32 %v411_v60, %v384_v7 }
  0xa9   : > { %v891_v30 = vpop.permute.xlu1 %233 }
  0xaa   : > { %v270_v52 = vmul.f32 %v895_v43, %v891_v30  ;;  %v271_v36 = vmul.f32 %v897_v44, %v891_v30  ;;  %v423_v57 = vadd.f32 %v415_v41, %v373_v50 }
  0xac   : > { %v445_v22 = vpop.permute.xlu0 %444 }
  0xae   : > { %v280_v42 = vpop.permute.xlu1 %279 }
  0xaf   : > { %v312_v46 = vmul.f32 %v307_v45, %v280_v42  ;;  %v313_v20 = vmul.f32 %v893_v39, %v280_v42  ;;  %v422_v45 = vadd.f32 %v414_v40, %v372_v49 }
  0xb0   : > { %v473_v7 = vpop.permute.xlu0 %472 }
  0xb1   : > { %v320_v39 = vadd.f32 %v312_v46, %v270_v52  ;;  %v321_v42 = vadd.f32 %v313_v20, %v271_v36 }
  0xb3   : > { %v388_v58 = vpop.permute.xlu1 %387 }
  0xb4   : > { %v417_v5 = vmul.f32 %v411_v60, %v388_v58  ;;  %v416_v8 = vmul.f32 %v407_v59, %v388_v58 }
  0xb6   : > { %v425_v14 = vadd.f32 %v417_v5, %v375_v11  ;;  %v424_v23 = vadd.f32 %v416_v8, %v374_v13 }
  0xb8   : > { %v330_v12 = vpop.permute.xlu1 %329  ;;  %v457_v29 = vadd.f32 %v445_v22, %v425_v14  ;;  %v456_v37 = vadd.f32 %v445_v22, %v424_v23 }
  0xb9   : > { %v362_v53 = vmul.f32 %v357_v54, %v330_v12  ;;  %v363_v56 = vmul.f32 %v361_v55, %v330_v12 }
  0xba   : > { %v465_v47 = vmax.f32 %v457_v29, 0.0  ;;  %v464_v51 = vmax.f32 %v456_v37, 0.0 }
  0xbb   : > { %v370_v63 = vadd.f32 %v362_v53, %v320_v39  ;;  %v371_v0 = vadd.f32 %v363_v56, %v321_v42 }
  0xbd   : > { %v450_v27 = vpop.permute.xlu1 %449 }
  0xbe   : > { %v458_v31 = vadd.f32 %v450_v27, %v426_v25  ;;  %v459_v32 = vadd.f32 %v450_v27, %v427_v26 }
  0xc0   : > { %v467_v38 = vmax.f32 %v459_v32, 0.0  ;;  %v466_v24 = vmax.f32 %v458_v31, 0.0 }
  0xc2   : > { %v380_v48 = vpop.permute.xlu1 %379  ;;  %503 = vmatprep.subr.mxu0 %v467_v38 }
  0xc3   : > { %504 = vmatpush1.msra.mxu0 %v466_v24  ;;  %v412_v58 = vmul.f32 %v407_v59, %v380_v48  ;;  %v413_v61 = vmul.f32 %v411_v60, %v380_v48  ;;  %v468_v59 = vld [vmem:[%s955_s3] sm:$0x3] }
  0xc4   : > { %505 = vmatprep.subr.mxu0 %v465_v47 }
  0xc5   : > { %506 = vmatpush1.msra.mxu0 %v464_v51  ;;  %v420_v4 = vadd.f32 %v412_v58, %v370_v63  ;;  %v421_v30 = vadd.f32 %v413_v61, %v371_v0 }
  0xc7   : > { %v440_v62 = vpop.permute.xlu1 %439 }
  0xc8   : > { %v454_v1 = vadd.f32 %v440_v62, %v422_v45  ;;  %v455_v2 = vadd.f32 %v440_v62, %v423_v57 }
  0xca   : > { %v462_v3 = vmax.f32 %v454_v1, 0.0  ;;  %v463_v43 = vmax.f32 %v455_v2, 0.0 }
  0xcb   : > { %v435_v44 = vpop.permute.xlu1 %434 }
  0xcc   : > { %v452_v54 = vadd.f32 %v435_v44, %v420_v4  ;;  %v453_v55 = vadd.f32 %v435_v44, %v421_v30  ;;  %507 = vmatprep.subr.mxu0 %v463_v43 }
  0xcd   : > { %508 = vmatpush1.msra.mxu0 %v462_v3 }
  0xce   : > { %v460_v5 = vmax.f32 %v452_v54, 0.0  ;;  %v461_v6 = vmax.f32 %v453_v55, 0.0 }
  0xd0   : > { %509 = vmatprep.subr.mxu0 %v461_v6 }
  0xd1   : > { %510 = vmatpush1.msra.mxu0 %v460_v5 }
  0xd2   : > { %643 = vmatmul.mubr.msk.f32.vlgmr.msra.gmra.mxu0 %vm475_vm0, %v468_v59 }
 0x192   : > { %v545_v60 = vpop.f32.mrf.mxu0 }
 0x193   : > { %v546_v9 = vadd.f32 %v545_v60, %v473_v7 }
 0x194   : > { %v547_v8 = vpop.f32.mrf.mxu0 }
 0x195   : > { %v548_v10 = vadd.f32 %v547_v8, %v473_v7 }
 0x197   : > { %v552_v11 = vcombine.low %v546_v9, %v548_v10 }
 0x199   : > { %644 = vst.sshfl [vmem:[%s218_s17] sm:$0x33 pattern:$0x76325410] %v552_v11 }
 0x19a   : > { %725 = shalt.err (!%p722_p3)
}
 0x19b   : > { %s726_s10 = scalar_lea.hbm %s575_s30, 64  ;;  %s730_s13 = scalar_lea.hbm %s957_s5, 128 }
 0x19c   : > { %p727_p4 = scmp.ne.s32.totalorder %s575_s30, %s726_s10  ;;  %p731_p9 = scmp.lt.s32.totalorder %s575_s30, %s957_s5 }
 0x19d   : > { %p732_p10 = scmp.lt.s32.totalorder %s730_s13, %s726_s10 }
 0x19e   : > { %p728_p7 = pnand %p727_p4, %p848_p5 }
 0x19f   : > { %p733_p11 = por %p732_p10, %p731_p9 }
 0x1a0   : > { %p729_p8 = pneg %p728_p7 }
 0x1a2   : > { %p734_p12 = pnand %p733_p11, %p729_p8 }
 0x1a4   : > { %737 = shalt.err (!%p734_p12)
}
 0x1a5   : > { %651 = dma.vmem_to_hbm [thread:$0]  (%p848_p5), %s578_s23, 64, %s575_s30, %s563_s6  }
 0x1a6 PF: > { %p657_p13 = scmp.ge.s32.totalorder %s772_s21, 2  ;;  %s589_s16 = sand.u32 1, %s760_s18  }
 0x1a7   : > { %s590_s17 = scalar_lea.sflag [#allocation3], %s589_s16 }
 0x1a8   : > { %p654_p0 = pnand %p657_p13, %p852_p6 }
 0x1aa   : > { %p655_p1 = pneg %p654_p0 }
 0x1ac   : > { %755 = dma.done.wait (%p655_p1), %s590_s17, 64  }
 0x1ad   : > { %757 = vsyncadd (%p655_p1), %s590_s17, 4294967232  ;;  %p15_p2 = scmp.ge.s32.totalorder %s835_s24, 4   ;;  %s960_s18 = smov %s764_s19 }
 0x1ae   : > { %s961_s19 = smov %s768_s20  ;;  %s962_s20 = smov %s846_s27 }
 0x1af   : > { %s963_s21 = smov %s835_s24  ;;  %17 = sbr.rel (!%p15_p2) target bundleno = 3 (0x3), region = 75 }
 0x1b4   :  { %595 = vsyncpa [#allocation3], 1 }
 0x1b5   :  { %597 = vsyncpa [#allocation3 + $0x1], 1 }

</bundles_post_ra>
